<compile_context>
chip_gen: v7x
topology: tpu7x:2x2x1
jax: 0.10.0
libtpu: 0.0.40
codegen_flags: <defaults>
</compile_context>

<pallas_src>
import functools

import jax
import jax.numpy as jnp
from jax import lax
from jax.experimental import pallas as pl
from jax.experimental.pallas import tpu as pltpu

NEG_SLOPE = 0.01  # F.leaky_relu default
LANE = 128

# Conservative VMEM budgets (bytes) sized for v7x (32 MiB scoped / 64 MiB phys).
_ADJ_TILE_BUDGET = 8 * 1024 * 1024    # double-buffered adjacency tile stream
_H_RESIDENT_BUDGET = 8 * 1024 * 1024  # whole (double-buffered) activation matrix
_VMEM_LIMIT = 40 * 1024 * 1024        # raised scoped limit (v5e default = 16 MiB)


def _leaky_relu(x):
    return jnp.where(x >= 0, x, NEG_SLOPE * x)


def _round_up(n, m):
    return ((n + m - 1) // m) * m


def _pad2d(a, rows, cols, dtype):
    a = a.astype(dtype)
    return jnp.pad(a, ((0, rows - a.shape[0]), (0, cols - a.shape[1])))


def _plan(num_nodes, feat_widths):
    """Pick (n_pad, tm, tk, h_resident) for the node dimension."""
    n_pad = _round_up(num_nodes, LANE)
    # Only bump to 256 granularity for large graphs (extra padding <= 12.5%/dim),
    # so tm=256 can divide n_pad; small graphs keep 128 granularity to avoid
    # blowing up the O(N^2) adjacency.
    if n_pad >= 1024:
        n_pad = _round_up(num_nodes, 256)
    # Row tile: keep >= 2 row blocks where possible so v7x's 2 TCs both get work.
    tm = 256 if (n_pad >= 512 and n_pad % 256 == 0) else 128
    # K tile: largest divisor of n_pad (full row preferred -> contiguous DMA and
    # a single K step) whose double-buffered adj stream fits the budget.
    tk = LANE
    for cand in (n_pad, 8192, 4096, 2048, 1024, 512, 256, 128):
        if cand <= n_pad and n_pad % cand == 0 and tm * cand * 2 * 2 <= _ADJ_TILE_BUDGET:
            tk = cand
            break
    fmax = max(feat_widths)
    h_resident = n_pad * fmax * 2 * 2 <= _H_RESIDENT_BUDGET
    return n_pad, tm, tk, h_resident


# ----------------------------------------------------------------------------- kernels


def _rows_matmul_kernel(h_ref, w_ref, o_ref):
    """Row-parallel hW = h @ W pre-multiply (hoists h@W out of the K loop)."""
    o_ref[...] = jnp.dot(h_ref[...], w_ref[...],
                         preferred_element_type=jnp.float32).astype(o_ref.dtype)


def _gcn_layer_kernel(*refs, apply_w, h_resident, tk):
    """One GCN layer row-block: out[i] = leaky_relu((sum_k adj[i,k] @ g[k]) [@ W])."""
    if apply_w:
        adj_ref, g_ref, w_ref, out_ref, acc_ref = refs
    else:
        adj_ref, g_ref, out_ref, acc_ref = refs
        w_ref = None
    k = pl.program_id(1)

    @pl.when(k == 0)
    def _():
        acc_ref[...] = jnp.zeros_like(acc_ref)

    if h_resident:
        g_blk = g_ref[pl.ds(pl.multiple_of(k * tk, tk), tk), :]
    else:
        g_blk = g_ref[...]
    acc_ref[...] += jnp.dot(adj_ref[...], g_blk, preferred_element_type=jnp.float32)

    @pl.when(k == pl.num_programs(1) - 1)
    def _():
        acc = acc_ref[...]
        if apply_w:
            acc = jnp.dot(acc.astype(jnp.bfloat16), w_ref[...],
                          preferred_element_type=jnp.float32)
        out_ref[...] = _leaky_relu(acc).astype(out_ref.dtype)


def _gcn_final_kernel(*refs, apply_w, h_resident, tk, out_valid):
    """Last GCN layer fused with fc1 -> lrelu -> fc2 -> lrelu -> softmax."""
    if apply_w:
        adj_ref, g_ref, w_ref, w1_ref, w2_ref, out_ref, acc_ref = refs
    else:
        adj_ref, g_ref, w1_ref, w2_ref, out_ref, acc_ref = refs
        w_ref = None
    k = pl.program_id(1)

    @pl.when(k == 0)
    def _():
        acc_ref[...] = jnp.zeros_like(acc_ref)

    if h_resident:
        g_blk = g_ref[pl.ds(pl.multiple_of(k * tk, tk), tk), :]
    else:
        g_blk = g_ref[...]
    acc_ref[...] += jnp.dot(adj_ref[...], g_blk, preferred_element_type=jnp.float32)

    @pl.when(k == pl.num_programs(1) - 1)
    def _():
        acc = acc_ref[...]
        if apply_w:
            acc = jnp.dot(acc.astype(jnp.bfloat16), w_ref[...],
                          preferred_element_type=jnp.float32)
        h = _leaky_relu(acc)                                               # GCN out
        h = _leaky_relu(jnp.dot(h.astype(jnp.bfloat16), w1_ref[...],
                                preferred_element_type=jnp.float32))       # fc1
        y = _leaky_relu(jnp.dot(h.astype(jnp.bfloat16), w2_ref[...],
                                preferred_element_type=jnp.float32))       # fc2
        # Mask padded output lanes so they do not perturb the softmax.
        col = lax.broadcasted_iota(jnp.int32, y.shape, 1)
        y = jnp.where(col < out_valid, y, -jnp.inf)
        m = jnp.max(y, axis=1, keepdims=True)
        e = jnp.exp(y - m)
        s = jnp.sum(e, axis=1, keepdims=True)
        out_ref[...] = (e * pl.reciprocal(s, approx=True)).astype(out_ref.dtype)


# ----------------------------------------------------------------------------- pallas_call builders


def _premul_rows(h_p, w_p, tm):
    """hW = h @ W, computed once per layer (row-parallel)."""
    n_pad, fin = h_p.shape
    fout = w_p.shape[1]
    return pl.pallas_call(
        _rows_matmul_kernel,
        out_shape=jax.ShapeDtypeStruct((n_pad, fout), jnp.bfloat16),
        grid_spec=pltpu.PrefetchScalarGridSpec(
            num_scalar_prefetch=0,
            grid=(n_pad // tm,),
            in_specs=[pl.BlockSpec((tm, fin), lambda i: (i, 0)),
                      pl.BlockSpec((fin, fout), lambda i: (0, 0))],
            out_specs=pl.BlockSpec((tm, fout), lambda i: (i, 0)),
        ),
        compiler_params=pltpu.CompilerParams(
            dimension_semantics=("parallel",),
            vmem_limit_bytes=_VMEM_LIMIT),
    )(h_p, w_p)


def _gcn_layer_call(adj_p, g_p, w_p, *, apply_w, h_resident, tm, tk):
    n_pad = adj_p.shape[0]
    gw = g_p.shape[1]
    out_w = w_p.shape[1] if apply_w else gw
    grid = (n_pad // tm, n_pad // tk)
    kernel = functools.partial(_gcn_layer_kernel, apply_w=apply_w,
                               h_resident=h_resident, tk=tk)
    if h_resident:
        g_spec = pl.BlockSpec((n_pad, gw), lambda i, k: (0, 0))   # resident, 1 DMA
    else:
        g_spec = pl.BlockSpec((tk, gw), lambda i, k: (k, 0))      # streamed per k
    in_specs = [pl.BlockSpec((tm, tk), lambda i, k: (i, k)), g_spec]
    args = [adj_p, g_p]
    if apply_w:
        in_specs.append(pl.BlockSpec(w_p.shape, lambda i, k: (0, 0)))
        args.append(w_p)
    return pl.pallas_call(
        kernel,
        out_shape=jax.ShapeDtypeStruct((n_pad, out_w), jnp.bfloat16),
        grid_spec=pltpu.PrefetchScalarGridSpec(
            num_scalar_prefetch=0,
            grid=grid,
            in_specs=in_specs,
            out_specs=pl.BlockSpec((tm, out_w), lambda i, k: (i, 0)),
            scratch_shapes=[pltpu.VMEM((tm, gw), jnp.float32)],
        ),
        compiler_params=pltpu.CompilerParams(
            dimension_semantics=("parallel", "arbitrary"),
            vmem_limit_bytes=_VMEM_LIMIT),
    )(*args)


def _gcn_final_call(adj_p, g_p, w_p, w1_p, w2_p, *, apply_w, h_resident, tm, tk,
                    out_valid):
    n_pad = adj_p.shape[0]
    gw = g_p.shape[1]
    f2 = w2_p.shape[1]
    grid = (n_pad // tm, n_pad // tk)
    kernel = functools.partial(_gcn_final_kernel, apply_w=apply_w,
                               h_resident=h_resident, tk=tk, out_valid=out_valid)
    if h_resident:
        g_spec = pl.BlockSpec((n_pad, gw), lambda i, k: (0, 0))
    else:
        g_spec = pl.BlockSpec((tk, gw), lambda i, k: (k, 0))
    in_specs = [pl.BlockSpec((tm, tk), lambda i, k: (i, k)), g_spec]
    args = [adj_p, g_p]
    if apply_w:
        in_specs.append(pl.BlockSpec(w_p.shape, lambda i, k: (0, 0)))
        args.append(w_p)
    in_specs += [pl.BlockSpec(w1_p.shape, lambda i, k: (0, 0)),
                 pl.BlockSpec(w2_p.shape, lambda i, k: (0, 0))]
    args += [w1_p, w2_p]
    return pl.pallas_call(
        kernel,
        out_shape=jax.ShapeDtypeStruct((n_pad, f2), jnp.float32),
        grid_spec=pltpu.PrefetchScalarGridSpec(
            num_scalar_prefetch=0,
            grid=grid,
            in_specs=in_specs,
            out_specs=pl.BlockSpec((tm, f2), lambda i, k: (i, 0)),
            scratch_shapes=[pltpu.VMEM((tm, gw), jnp.float32)],
        ),
        compiler_params=pltpu.CompilerParams(
            dimension_semantics=("parallel", "arbitrary"),
            vmem_limit_bytes=_VMEM_LIMIT),
    )(*args)


# ----------------------------------------------------------------------------- glue (plain JAX)


def build_norm_adj(edge_index, num_nodes, edge_w=None):
    """Dense equivalent of torch_geometric gcn_norm (add_remaining_self_loops)."""
    src = edge_index[0]
    dst = edge_index[1]
    if edge_w is None:
        edge_w = jnp.ones(src.shape[0], dtype=jnp.float32)
    a = jnp.zeros((num_nodes, num_nodes), dtype=jnp.float32)
    # message flows source -> target : A[target, source] = w
    a = a.at[dst, src].add(edge_w)
    # add_remaining_self_loops: only add a unit self-loop to nodes that lack one.
    is_self = (src == dst).astype(jnp.float32)
    self_cnt = jnp.zeros((num_nodes,), jnp.float32).at[src].add(is_self)
    a = a + jnp.diag(jnp.where(self_cnt > 0, 0.0, 1.0))
    deg = jnp.sum(a, axis=1)                     # in-degree (incl. self loop)
    dinv = jnp.where(deg > 0, 1.0 / jnp.sqrt(deg), 0.0)
    return dinv[:, None] * a * dinv[None, :]


def prepare_adjacency(edge_index, num_nodes, n_pad, edge_w=None):
    """Padded bf16 normalized adjacency.  For static graphs compute once & reuse."""
    adj = build_norm_adj(edge_index, num_nodes, edge_w)
    return _pad2d(adj, n_pad, n_pad, jnp.bfloat16)


def actor_forward(x, edge_index, params, n_gcn, edge_w=None, adj_p=None):
    """params = {'gcn': [W0..W_{n_gcn-1}], 'fc1': Wfc1, 'fc2': Wfc2}, weights [in,out]."""
    num_nodes = x.shape[0]
    out_size = params["fc2"].shape[1]

    gcn_w = [
        _pad2d(w, _round_up(w.shape[0], LANE), _round_up(w.shape[1], LANE), jnp.bfloat16)
        for w in params["gcn"]
    ]
    fc1_p = _pad2d(params["fc1"], _round_up(params["fc1"].shape[0], LANE),
                   _round_up(params["fc1"].shape[1], LANE), jnp.bfloat16)
    fc2_p = _pad2d(params["fc2"], _round_up(params["fc2"].shape[0], LANE),
                   _round_up(params["fc2"].shape[1], LANE), jnp.bfloat16)

    feat_widths = [gcn_w[0].shape[0]] + [w.shape[1] for w in gcn_w]
    n_pad, tm, tk, h_resident = _plan(num_nodes, feat_widths)

    if adj_p is None:
        adj_p = prepare_adjacency(edge_index, num_nodes, n_pad, edge_w)

    h = _pad2d(x, n_pad, gcn_w[0].shape[0], jnp.bfloat16)

    out_p = None
    for i in range(n_gcn):
        w = gcn_w[i]
        fin, fout = w.shape
        apply_w = fin <= fout                 # run the N^2 matmul at the narrower width
        # fin > fout: hoist h@W out of the K loop (computed once, row-parallel).
        g = h if apply_w else _premul_rows(h, w, tm)
        if i < n_gcn - 1:
            h = _gcn_layer_call(adj_p, g, w, apply_w=apply_w, h_resident=h_resident,
                                tm=tm, tk=tk)
        else:
            out_p = _gcn_final_call(adj_p, g, w, fc1_p, fc2_p, apply_w=apply_w,
                                    h_resident=h_resident, tm=tm, tk=tk,
                                    out_valid=out_size)
    return out_p[:num_nodes, :out_size]


def actor_reference(x, edge_index, params, n_gcn, edge_w=None):
    """Pure-JAX f32 reference (same math as the PyTorch Actor, normalize=False)."""
    adj = build_norm_adj(edge_index, x.shape[0], edge_w)
    h = x
    for i in range(n_gcn):
        h = _leaky_relu(adj @ (h @ params["gcn"][i]))
    h = _leaky_relu(h @ params["fc1"])
    y = _leaky_relu(h @ params["fc2"])
    return jax.nn.softmax(y, axis=1)


def init_params(key, in_size, out_size, hide_size_list, n_gcn):
    size_list = [in_size] + list(hide_size_list) + [out_size]
    params = {"gcn": []}
    keys = jax.random.split(key, n_gcn + 2)
    for i in range(n_gcn):
        fan_in, fan_out = size_list[i], size_list[i + 1]
        scale = jnp.sqrt(6.0 / (fan_in + fan_out))  # glorot (GCNConv default)
        params["gcn"].append(
            jax.random.uniform(keys[i], (fan_in, fan_out), jnp.float32, -scale, scale)
        )
    fin, fout = size_list[n_gcn], size_list[n_gcn + 1]
    scale = 1.0 / jnp.sqrt(fin)
    params["fc1"] = jax.random.uniform(keys[n_gcn], (fin, fout), jnp.float32, -scale, scale)
    fin2, fout2 = size_list[n_gcn + 1], size_list[-1]
    scale2 = 1.0 / jnp.sqrt(fin2)
    params["fc2"] = jax.random.uniform(keys[n_gcn + 1], (fin2, fout2), jnp.float32, -scale2, scale2)
    return params


if __name__ == "__main__":
    # Small deterministic example consistent with Actor(in_size, out_size, hide_size_list, n_gcn)
    in_size, out_size = 8, 8
    hide_size_list = [32, 32, 32]
    n_gcn = 2
    num_nodes = 16

    key = jax.random.PRNGKey(0)
    k_x, k_p = jax.random.split(key)

    x = jax.random.normal(k_x, (num_nodes, in_size), dtype=jnp.float32)

    # deterministic ring graph, made symmetric (undirected)
    src = jnp.arange(num_nodes, dtype=jnp.int32)
    dst = (src + 1) % num_nodes
    edge_index = jnp.stack(
        [jnp.concatenate([src, dst]), jnp.concatenate([dst, src])], axis=0
    )

    params = init_params(k_p, in_size, out_size, hide_size_list, n_gcn)

    out = actor_forward(x, edge_index, params, n_gcn)
    jax.block_until_ready(out)

    # sanity: shape, rows of softmax output sum to 1, and agreement with the
    # pure-JAX f32 reference (bf16 inputs + f32 accumulation -> loose tolerance).
    ref = actor_reference(x, edge_index, params, n_gcn)
    assert out.shape == (num_nodes, out_size)
    assert jnp.allclose(jnp.sum(out, axis=1), 1.0, atol=1e-2)
    assert jnp.allclose(out, ref, atol=5e-2)
    print("KERNEL_OK")
</pallas_src>

<mosaic_0001>
module attributes {stable_mosaic.version = 11 : i64} {
  func.func @_gcn_layer_kernel(%arg0: i32, %arg1: i32, %arg2: memref<128x128xbf16, #tpu.memory_space<vmem>>, %arg3: memref<128x128xbf16, #tpu.memory_space<vmem>>, %arg4: memref<128x128xbf16, #tpu.memory_space<vmem>>, %arg5: memref<128x128xbf16, #tpu.memory_space<vmem>>, %arg6: memref<128x128xf32, #tpu.memory_space<vmem>>) attributes {dimension_semantics = [#tpu.dimension_semantics<parallel>, #tpu.dimension_semantics<arbitrary>], iteration_bounds = array<i64: 1, 1>, scalar_prefetch = 0 : i64, scratch_operands = 1 : i64, tpu.core_type = #tpu.core_type<tc>, window_params = [{transform_indices = @transform_0, window_bounds = array<i64: 128, 128>}, {pipeline_mode = #tpu.pipeline_mode<synchronous>, transform_indices = @transform_1, window_bounds = array<i64: 128, 128>}, {pipeline_mode = #tpu.pipeline_mode<synchronous>, transform_indices = @transform_2, window_bounds = array<i64: 128, 128>}, {transform_indices = @transform_3, window_bounds = array<i64: 128, 128>}]} {
    %c0_i32 = arith.constant 0 : i32
    %0 = arith.cmpi eq, %arg1, %c0_i32 : i32
    %1 = arith.extui %0 : i1 to i32
    %c0_i32_0 = arith.constant 0 : i32
    %2 = arith.cmpi ne, %1, %c0_i32_0 : i32
    scf.if %2 {
      %cst_9 = arith.constant 0.000000e+00 : f32
      %15 = vector.broadcast %cst_9 : f32 to vector<128x128xf32>
      %c0_10 = arith.constant 0 : index
      %c0_11 = arith.constant 0 : index
      %16 = vector.load %arg6[%c0_10, %c0_11] : memref<128x128xf32, #tpu.memory_space<vmem>>, vector<128x128xf32>
      tpu.vector_store %arg6[%c0_10, %c0_11], %15 {strides = array<i32>} : memref<128x128xf32, #tpu.memory_space<vmem>>, vector<128x128xf32>,
    } else {
    }
    %c128_i32 = arith.constant 128 : i32
    %3 = arith.muli %arg1, %c128_i32 : i32
    %4 = tpu.assume_multiple %3, 128 : i32
    %5 = arith.index_cast %4 : i32 to index
    %c0 = arith.constant 0 : index
    %6 = vector.load %arg3[%5, %c0] : memref<128x128xbf16, #tpu.memory_space<vmem>>, vector<128x128xbf16>
    %c0_1 = arith.constant 0 : index
    %c0_2 = arith.constant 0 : index
    %7 = vector.load %arg6[%c0_1, %c0_2] : memref<128x128xf32, #tpu.memory_space<vmem>>, vector<128x128xf32>
    %c0_3 = arith.constant 0 : index
    %c0_4 = arith.constant 0 : index
    %8 = vector.load %arg2[%c0_3, %c0_4] : memref<128x128xbf16, #tpu.memory_space<vmem>>, vector<128x128xbf16>
    %cst = arith.constant dense<0.000000e+00> : vector<128x128xf32>
    %9 = tpu.matmul %8, %6, %cst {dimension_numbers = #tpu.dot_dimension_numbers<[1], [0], [0], [1], [0, 0, 1, 1], [], []>} : vector<128x128xbf16>, vector<128x128xbf16>, vector<128x128xf32> -> vector<128x128xf32>
    %10 = arith.addf %7, %9 : vector<128x128xf32>
    %c0_5 = arith.constant 0 : index
    %c0_6 = arith.constant 0 : index
    %11 = vector.load %arg6[%c0_5, %c0_6] : memref<128x128xf32, #tpu.memory_space<vmem>>, vector<128x128xf32>
    tpu.vector_store %arg6[%c0_5, %c0_6], %10 {strides = array<i32>} : memref<128x128xf32, #tpu.memory_space<vmem>>, vector<128x128xf32>,
    %c0_i32_7 = arith.constant 0 : i32
    %12 = arith.cmpi eq, %arg1, %c0_i32_7 : i32
    %13 = arith.extui %12 : i1 to i32
    %c0_i32_8 = arith.constant 0 : i32
    %14 = arith.cmpi ne, %13, %c0_i32_8 : i32
    scf.if %14 {
      %c0_9 = arith.constant 0 : index
      %c0_10 = arith.constant 0 : index
      %15 = vector.load %arg6[%c0_9, %c0_10] : memref<128x128xf32, #tpu.memory_space<vmem>>, vector<128x128xf32>
      %16 = arith.truncf %15 : vector<128x128xf32> to vector<128x128xbf16>
      %c0_11 = arith.constant 0 : index
      %c0_12 = arith.constant 0 : index
      %17 = vector.load %arg4[%c0_11, %c0_12] : memref<128x128xbf16, #tpu.memory_space<vmem>>, vector<128x128xbf16>
      %cst_13 = arith.constant dense<0.000000e+00> : vector<128x128xf32>
      %18 = tpu.matmul %16, %17, %cst_13 {dimension_numbers = #tpu.dot_dimension_numbers<[1], [0], [0], [1], [0, 0, 1, 1], [], []>} : vector<128x128xbf16>, vector<128x128xbf16>, vector<128x128xf32> -> vector<128x128xf32>
      %cst_14 = arith.constant 0.000000e+00 : f32
      %19 = vector.broadcast %cst_14 : f32 to vector<128x128xf32>
      %20 = arith.cmpf oge, %18, %19 : vector<128x128xf32>
      %cst_15 = arith.constant 0.00999999977 : f32
      %21 = vector.broadcast %cst_15 : f32 to vector<128x128xf32>
      %22 = arith.mulf %21, %18 : vector<128x128xf32>
      %23 = arith.select %20, %18, %22 : vector<128x128xi1>, vector<128x128xf32>
      %24 = arith.truncf %23 : vector<128x128xf32> to vector<128x128xbf16>
      %c0_16 = arith.constant 0 : index
      %c0_17 = arith.constant 0 : index
      %25 = vector.load %arg5[%c0_16, %c0_17] : memref<128x128xbf16, #tpu.memory_space<vmem>>, vector<128x128xbf16>
      tpu.vector_store %arg5[%c0_16, %c0_17], %24 {strides = array<i32>} : memref<128x128xbf16, #tpu.memory_space<vmem>>, vector<128x128xbf16>,
    } else {
    }
    return
  }
  func.func @transform_0(%arg0: i32, %arg1: i32) -> (i32, i32) {
    %c0_i32 = arith.constant 0 : i32
    return %arg0, %arg1 : i32, i32
  }
  func.func @transform_1(%arg0: i32, %arg1: i32) -> (i32, i32) {
    %c0_i32 = arith.constant 0 : i32
    %c0_i32_0 = arith.constant 0 : i32
    %c0_i32_1 = arith.constant 0 : i32
    return %c0_i32, %c0_i32_0 : i32, i32
  }
  func.func @transform_2(%arg0: i32, %arg1: i32) -> (i32, i32) {
    %c0_i32 = arith.constant 0 : i32
    %c0_i32_0 = arith.constant 0 : i32
    %c0_i32_1 = arith.constant 0 : i32
    return %c0_i32, %c0_i32_0 : i32, i32
  }
  func.func @transform_3(%arg0: i32, %arg1: i32) -> (i32, i32) {
    %c0_i32 = arith.constant 0 : i32
    %c0_i32_0 = arith.constant 0 : i32
    return %arg0, %c0_i32 : i32, i32
  }
}

</mosaic_0001>

<bundles_post_ra>
// kernel: tpu_custom_call.1
= control target key start
LH: loop header
LB: loop body
LE: loop exit
PB: predicated region body
PF: predicated region fallthrough
CT: control target
= control target key end

     0   :  { %8 = vsyncpa [#allocation4], 0  ;;  %s1107_s0 = inlined_call_operand.hbm [shape: bf16[128,128], index: 0, kind: input, shape index: {}]   ;;  %s1108_s1 = inlined_call_operand.hbm [shape: bf16[128,128], index: 1, kind: input, shape index: {}]   ;;  %s1109_s2 = inlined_call_operand.hbm [shape: bf16[128,128], index: 2, kind: input, shape index: {}]   ;;  %s1110_s3 = inlined_call_operand.hbm [shape: bf16[128,128], index: 3, kind: output, shape index: {}]  }
   0x1   :  { %9 = vsyncpa [#allocation7], 0 }
   0x2   :  { %10 = vsyncpa [#allocation5], 0  ;;  %s1014_s12 = smov [#allocation6]   ;;  %s1015_s14 = smov [#allocation3]  }
   0x3   :  { %s28_s13 = sshll.u32 %s1014_s12, 4  ;;  %s16_s15 = sshll.u32 %s1015_s14, 4  ;;  %s29_s13 = int_to_ptr.vmem [resolvable:$true] %s28_s13  ;;  %s1040_s15 = int_to_ptr.vmem [resolvable:$true] %s16_s15 }
   0x4   :  { %s920_s18 = scalar_lea.hbm %s1108_s1, 1024 }
   0x5   :  { %p921_p0 = scmp.ne.s32.totalorder %s1108_s1, %s920_s18  ;;  %p924_p1 = scmp.lt.u32.totalorder %s920_s18, %s1108_s1 }
   0x7   :  { %p926_p2 = pnand %p924_p1, %p921_p0 }
   0x9   :  { %929 = shalt.err (!%p926_p2)
}
   0xa   :  { %s930_s23 = scalar_lea.vmem %s29_s13, 1024  ;;  %p935_p4 = scmp.lt.s32.totalorder %s29_s13, %s29_s13 }
   0xb   :  { %p931_p3 = scmp.ne.s32.totalorder %s29_s13, %s930_s23  ;;  %p936_p5 = scmp.lt.s32.totalorder %s930_s23, %s930_s23 }
   0xd   :  { %p937_p6 = por %p936_p5, %p935_p4 }
   0xf   :  { %p938_p7 = pnand %p937_p6, %p931_p3 }
  0x11   :  { %941 = shalt.err (!%p938_p7)
}
  0x12   :  { %s1016_s24 = smov 64   ;;  %s1017_s25 = smov 4  }
  0x13   :  { %34 = dma.hbm_to_vmem [thread:$0]  %s1108_s1, 1024, %s29_s13, [#allocation7], %s1016_s24, %s1016_s24, %s1017_s25  }
  0x14   :  { %s942_s30 = scalar_lea.hbm %s1107_s0, 1024 }
  0x15   :  { %p943_p8 = scmp.ne.s32.totalorder %s1107_s0, %s942_s30  ;;  %p946_p9 = scmp.lt.u32.totalorder %s942_s30, %s1107_s0 }
  0x17   :  { %p948_p10 = pnand %p946_p9, %p943_p8 }
  0x19   :  { %951 = shalt.err (!%p948_p10)
}
  0x1a   :  { %s952_s8 = scalar_lea.vmem %s1040_s15, 1024  ;;  %p957_p12 = scmp.lt.s32.totalorder %s1040_s15, %s1040_s15 }
  0x1b   :  { %p953_p11 = scmp.ne.s32.totalorder %s1040_s15, %s952_s8  ;;  %p958_p13 = scmp.lt.s32.totalorder %s952_s8, %s952_s8 }
  0x1d   :  { %p959_p0 = por %p958_p13, %p957_p12 }
  0x1f   :  { %p960_p1 = pnand %p959_p0, %p953_p11 }
  0x21   :  { %963 = shalt.err (!%p960_p1)
}
  0x22   :  { %22 = dma.hbm_to_vmem [thread:$0]  %s1107_s0, 1024, %s1040_s15, [#allocation4], %s1016_s24, %s1016_s24, %s1017_s25  }
  0x23   :  { %s1018_s10 = smov [#allocation8]   ;;  %s964_s14 = scalar_lea.hbm %s1109_s2, 1024 }
  0x24   :  { %s40_s11 = sshll.u32 %s1018_s10, 4  ;;  %p965_p2 = scmp.ne.s32.totalorder %s1109_s2, %s964_s14  ;;  %s41_s11 = int_to_ptr.vmem [resolvable:$true] %s40_s11 }
  0x25   :  { %p968_p3 = scmp.lt.u32.totalorder %s964_s14, %s1109_s2 }
  0x27   :  { %p970_p4 = pnand %p968_p3, %p965_p2 }
  0x29   :  { %973 = shalt.err (!%p970_p4)
}
  0x2a   :  { %s974_s20 = scalar_lea.vmem %s41_s11, 1024  ;;  %p979_p6 = scmp.lt.s32.totalorder %s41_s11, %s41_s11 }
  0x2b   :  { %p975_p5 = scmp.ne.s32.totalorder %s41_s11, %s974_s20  ;;  %p980_p7 = scmp.lt.s32.totalorder %s974_s20, %s974_s20 }
  0x2d   :  { %p981_p8 = por %p980_p7, %p979_p6 }
  0x2f   :  { %p982_p9 = pnand %p981_p8, %p975_p5 }
  0x31   :  { %985 = shalt.err (!%p982_p9)
}
  0x32   :  { %46 = dma.hbm_to_vmem [thread:$0]  %s1109_s2, 1024, %s41_s11, [#allocation7], %s1016_s24, %s1016_s24, %s1017_s25  }
  0x33   :  { %1008 = dma.done.wait [#allocation4], 1024  }
  0x34   :  { %1009 = vsyncadd [#allocation4], 4294966272 }
  0x35   :  { %1010 = dma.done.wait [#allocation7], 2048  }
  0x36   :  { %1011 = vsyncadd [#allocation7], 4294965248  ;;  %v896_v0 = vld [vmem:[#allocation6] sm:$0xff]   ;;  %v897_v1 = vld [vmem:[#allocation6 + $0x8] sm:$0xff]   ;;  %s1019_s2 = smov [#allocation9]  }
  0x37   :  { %826 = vmatprep.subr.bf16.mxu0 %v896_v0  ;;  %v898_v2 = vld [vmem:[#allocation6 + $0x10] sm:$0xff]   ;;  %v899_v3 = vld [vmem:[#allocation6 + $0x18] sm:$0xff]   ;;  %v904_v4 = vld [vmem:[#allocation3] sm:$0xff]   ;;  %s676_s21 = sshll.u32 %s1019_s2, 4  ;;  %s677_s21 = int_to_ptr.vmem [resolvable:$true] %s676_s21 }
  0x38   :  { %827 = vmatpush3.bf16.msra.mxu0 %v896_v0  ;;  %842 = vmatprep.mubr.bf16.mxu0 %v904_v4  ;;  %v900_v5 = vld [vmem:[#allocation6 + $0x20] sm:$0xff]   ;;  %v901_v6 = vld [vmem:[#allocation6 + $0x28] sm:$0xff]   ;;  %v902_v9 = vld [vmem:[#allocation6 + $0x30] sm:$0xff]   ;;  %s986_s22 = scalar_lea.vmem %s677_s21, 1024  ;;  %p991_p11 = scmp.lt.s32.totalorder %s677_s21, %s677_s21 }
  0x39   :  { %828 = vmatprep.subr.bf16.mxu0 %v897_v1  ;;  %v912_v7 = vld [vmem:[#allocation8] sm:$0xff]   ;;  %v913_v8 = vld [vmem:[#allocation8 + $0x8] sm:$0xff]   ;;  %v914_v10 = vld [vmem:[#allocation8 + $0x10] sm:$0xff]   ;;  %p987_p10 = scmp.ne.s32.totalorder %s677_s21, %s986_s22  ;;  %p992_p12 = scmp.lt.s32.totalorder %s986_s22, %s986_s22 }
  0x3a   :  { %858 = vmatprep.subr.bf16.mxu1 %v912_v7  ;;  %v903_v11 = vld [vmem:[#allocation6 + $0x38] sm:$0xff]   ;;  %v916_v13 = vld [vmem:[#allocation8 + $0x20] sm:$0xff]   ;;  %v905_v14 = vld [vmem:[#allocation3 + $0x8] sm:$0xff]  }
  0x3b   :  { %859 = vmatpush3.bf16.msra.mxu1 %v912_v7  ;;  %v915_v12 = vld [vmem:[#allocation8 + $0x18] sm:$0xff]   ;;  %v906_v15 = vld [vmem:[#allocation3 + $0x10] sm:$0xff]   ;;  %v917_v16 = vld [vmem:[#allocation8 + $0x28] sm:$0xff]   ;;  %p993_p13 = por %p992_p12, %p991_p11 }
  0x3c   :  { %829 = vmatpush3.bf16.msra.mxu0 %v897_v1  ;;  %860 = vmatprep.subr.bf16.mxu1 %v913_v8  ;;  %v918_v17 = vld [vmem:[#allocation8 + $0x30] sm:$0xff]   ;;  %v907_v18 = vld [vmem:[#allocation3 + $0x18] sm:$0xff]   ;;  %v908_v19 = vld [vmem:[#allocation3 + $0x20] sm:$0xff]  }
  0x3d   :  { %830 = vmatprep.subr.bf16.mxu0 %v898_v2  ;;  %v909_v20 = vld [vmem:[#allocation3 + $0x28] sm:$0xff]   ;;  %v910_v21 = vld [vmem:[#allocation3 + $0x30] sm:$0xff]   ;;  %v911_v22 = vld [vmem:[#allocation3 + $0x38] sm:$0xff]   ;;  %p994_p0 = pnand %p993_p13, %p987_p10 }
  0x3e   :  { %v919_v23 = vld [vmem:[#allocation8 + $0x38] sm:$0xff]  }
  0x3f   :  { %861 = vmatpush3.bf16.msra.mxu1 %v913_v8 }
  0x40   :  { %831 = vmatpush3.bf16.msra.mxu0 %v898_v2  ;;  %862 = vmatprep.subr.bf16.mxu1 %v914_v10 }
  0x41   :  { %832 = vmatprep.subr.bf16.mxu0 %v899_v3 }
  0x43   :  { %863 = vmatpush3.bf16.msra.mxu1 %v914_v10 }
  0x44   :  { %833 = vmatpush3.bf16.msra.mxu0 %v899_v3  ;;  %864 = vmatprep.subr.bf16.mxu1 %v915_v12 }
  0x45   :  { %834 = vmatprep.subr.bf16.mxu0 %v900_v5 }
  0x47   :  { %865 = vmatpush3.bf16.msra.mxu1 %v915_v12 }
  0x48   :  { %835 = vmatpush3.bf16.msra.mxu0 %v900_v5  ;;  %866 = vmatprep.subr.bf16.mxu1 %v916_v13 }
  0x49   :  { %836 = vmatprep.subr.bf16.mxu0 %v901_v6 }
  0x4b   :  { %867 = vmatpush3.bf16.msra.mxu1 %v916_v13 }
  0x4c   :  { %837 = vmatpush3.bf16.msra.mxu0 %v901_v6  ;;  %868 = vmatprep.subr.bf16.mxu1 %v917_v16 }
  0x4d   :  { %838 = vmatprep.subr.bf16.mxu0 %v902_v9 }
  0x4f   :  { %869 = vmatpush3.bf16.msra.mxu1 %v917_v16 }
  0x50   :  { %839 = vmatpush3.bf16.msra.mxu0 %v902_v9  ;;  %870 = vmatprep.subr.bf16.mxu1 %v918_v17 }
  0x51   :  { %840 = vmatprep.subr.bf16.mxu0 %v903_v11 }
  0x53   :  { %871 = vmatpush3.bf16.msra.mxu1 %v918_v17 }
  0x54   :  { %841 = vmatpush3.bf16.msra.mxu0 %v903_v11  ;;  %872 = vmatprep.subr.bf16.mxu1 %v919_v23 }
  0x57   :  { %843 = vmatmul.mubr.bf16.vlgmr.msra.gmra.mrb[0].mxu0 %v905_v14  ;;  %873 = vmatpush3.bf16.msra.mxu1 %v919_v23 }
  0x58   :  { %846 = vmatprep.mubr.bf16.mxu0 %v906_v15 }
  0x5f   :  { %847 = vmatmul.mubr.bf16.gmra.mrb[4].mxu0 %v907_v18 }
  0x60   :  { %850 = vmatprep.mubr.bf16.mxu0 %v908_v19 }
  0x67   :  { %851 = vmatmul.mubr.bf16.gmra.mrb[8].mxu0 %v909_v20 }
  0x68   :  { %854 = vmatprep.mubr.bf16.mxu0 %v910_v21 }
  0x6f   :  { %855 = vmatmul.mubr.bf16.gmra.mrb[12].mxu0 %v911_v22 }
 0x12a   :  { %v844_v24 = vpop.f32.mrb[0].mxu0 }
 0x12b   :  { %v260_v25 = vpop.f32.mrb[1].mxu0 }
 0x12c   :  { %v845_v26 = vpop.f32.mrb[2].mxu0 }
 0x12d   :  { %v375_v27 = vpack.c.bf16 %v845_v26, %v844_v24  ;;  %v263_v28 = vpop.f32.mrb[3].mxu0 }
 0x12e   :  { %v374_v29 = vpack.c.bf16 %v263_v28, %v260_v25 }
 0x130   :  { %874 = vmatprep.mubr.bf16.mxu1 %v374_v29 }
 0x131   :  { %875 = vmatmul.mubr.bf16.vlgmr.msra.gmra.mrb[0].mxu1 %v375_v27 }
 0x132   :  { %v848_v30 = vpop.f32.mrb[4].mxu0 }
 0x133   :  { %v276_v31 = vpop.f32.mrb[5].mxu0 }
 0x134   :  { %v849_v32 = vpop.f32.mrb[6].mxu0 }
 0x135   :  { %v377_v33 = vpack.c.bf16 %v849_v32, %v848_v30  ;;  %v279_v34 = vpop.f32.mrb[7].mxu0 }
 0x136   :  { %v376_v35 = vpack.c.bf16 %v279_v34, %v276_v31 }
 0x138   :  { %878 = vmatprep.mubr.bf16.mxu1 %v376_v35 }
 0x139   :  { %879 = vmatmul.mubr.bf16.gmra.mrb[4].mxu1 %v377_v33 }
 0x13a   :  { %v852_v36 = vpop.f32.mrb[8].mxu0 }
 0x13b   :  { %v292_v37 = vpop.f32.mrb[9].mxu0 }
 0x13c   :  { %v853_v38 = vpop.f32.mrb[10].mxu0 }
 0x13d   :  { %v379_v39 = vpack.c.bf16 %v853_v38, %v852_v36  ;;  %v295_v40 = vpop.f32.mrb[11].mxu0 }
 0x13e   :  { %v378_v41 = vpack.c.bf16 %v295_v40, %v292_v37 }
 0x140   :  { %882 = vmatprep.mubr.bf16.mxu1 %v378_v41 }
 0x141   :  { %883 = vmatmul.mubr.bf16.gmra.mrb[8].mxu1 %v379_v39 }
 0x142   :  { %v856_v42 = vpop.f32.mrb[12].mxu0 }
 0x143   :  { %v308_v43 = vpop.f32.mrb[13].mxu0 }
 0x144   :  { %v857_v44 = vpop.f32.mrb[14].mxu0 }
 0x145   :  { %v381_v45 = vpack.c.bf16 %v857_v44, %v856_v42  ;;  %v311_v46 = vpop.f32.mrb[15].mxu0 }
 0x146   :  { %v380_v47 = vpack.c.bf16 %v311_v46, %v308_v43 }
 0x148   :  { %886 = vmatprep.mubr.bf16.mxu1 %v380_v47 }
 0x149   :  { %887 = vmatmul.mubr.bf16.gmra.mrb[12].mxu1 %v381_v45 }
 0x204   :  { %v876_v48 = vpop.f32.mrb[0].mxu1 }
 0x205   :  { %v561_v49 = vmul.f32 0.01, %v876_v48  ;;  %v480_v50 = vpop.f32.mrb[1].mxu1  ;;  %vm545_vm0 = vcmp.ge.f32.partialorder %v876_v48, 0.0 }
 0x206   :  { %v559_v51 = vmul.f32 0.01, %v480_v50  ;;  %v877_v52 = vpop.f32.mrb[2].mxu1  ;;  %vm543_vm1 = vcmp.ge.f32.partialorder %v480_v50, 0.0 }
 0x207   :  { %vm546_vm2 = vcmp.ge.f32.partialorder %v877_v52, 0.0  ;;  %v562_v53 = vmul.f32 0.01, %v877_v52  ;;  %v483_v54 = vpop.f32.mrb[3].mxu1  ;;  %v577_v56 = vsel %vm545_vm0, %v876_v48, %v561_v49 }
 0x208   :  { %vm544_vm3 = vcmp.ge.f32.partialorder %v483_v54, 0.0  ;;  %v560_v55 = vmul.f32 0.01, %v483_v54  ;;  %v575_v58 = vsel %vm543_vm1, %v480_v50, %v559_v51 }
 0x209   :  { %v578_v57 = vsel %vm546_vm2, %v877_v52, %v562_v53 }
 0x20a   :  { %v755_v59 = vpack.c.bf16 %v578_v57, %v577_v56  ;;  %v576_v60 = vsel %vm544_vm3, %v483_v54, %v560_v55 }
 0x20b   :  { %v750_v61 = vpack.c.bf16 %v576_v60, %v575_v58 }
 0x20c   :  { %787 = vst [vmem:[#allocation9 + $0x8] sm:$0xff] %v755_v59   ;;  %v880_v62 = vpop.f32.mrb[4].mxu1 }
 0x20d   :  { %751 = vst [vmem:[#allocation9] sm:$0xff] %v750_v61   ;;  %v565_v63 = vmul.f32 0.01, %v880_v62  ;;  %v496_v0 = vpop.f32.mrb[5].mxu1  ;;  %vm549_vm4 = vcmp.ge.f32.partialorder %v880_v62, 0.0 }
 0x20e   :  { %v563_v1 = vmul.f32 0.01, %v496_v0  ;;  %v881_v2 = vpop.f32.mrb[6].mxu1  ;;  %vm547_vm5 = vcmp.ge.f32.partialorder %v496_v0, 0.0 }
 0x20f   :  { %vm550_vm6 = vcmp.ge.f32.partialorder %v881_v2, 0.0  ;;  %v566_v3 = vmul.f32 0.01, %v881_v2  ;;  %v499_v4 = vpop.f32.mrb[7].mxu1  ;;  %v581_v6 = vsel %vm549_vm4, %v880_v62, %v565_v63 }
 0x210   :  { %vm548_vm7 = vcmp.ge.f32.partialorder %v499_v4, 0.0  ;;  %v564_v5 = vmul.f32 0.01, %v499_v4  ;;  %v579_v8 = vsel %vm547_vm5, %v496_v0, %v563_v1 }
 0x211   :  { %v582_v7 = vsel %vm550_vm6, %v881_v2, %v566_v3 }
 0x212   :  { %v765_v9 = vpack.c.bf16 %v582_v7, %v581_v6  ;;  %v580_v10 = vsel %vm548_vm7, %v499_v4, %v564_v5 }
 0x213   :  { %v760_v11 = vpack.c.bf16 %v580_v10, %v579_v8 }
 0x214   :  { %789 = vst [vmem:[#allocation9 + $0x18] sm:$0xff] %v765_v9   ;;  %v884_v12 = vpop.f32.mrb[8].mxu1 }
 0x215   :  { %788 = vst [vmem:[#allocation9 + $0x10] sm:$0xff] %v760_v11   ;;  %v569_v13 = vmul.f32 0.01, %v884_v12  ;;  %v512_v14 = vpop.f32.mrb[9].mxu1  ;;  %vm553_vm8 = vcmp.ge.f32.partialorder %v884_v12, 0.0 }
 0x216   :  { %v567_v15 = vmul.f32 0.01, %v512_v14  ;;  %v885_v16 = vpop.f32.mrb[10].mxu1  ;;  %vm551_vm9 = vcmp.ge.f32.partialorder %v512_v14, 0.0 }
 0x217   :  { %vm554_vm10 = vcmp.ge.f32.partialorder %v885_v16, 0.0  ;;  %v570_v17 = vmul.f32 0.01, %v885_v16  ;;  %v515_v18 = vpop.f32.mrb[11].mxu1  ;;  %v585_v20 = vsel %vm553_vm8, %v884_v12, %v569_v13 }
 0x218   :  { %vm552_vm11 = vcmp.ge.f32.partialorder %v515_v18, 0.0  ;;  %v568_v19 = vmul.f32 0.01, %v515_v18  ;;  %v583_v22 = vsel %vm551_vm9, %v512_v14, %v567_v15 }
 0x219   :  { %v586_v21 = vsel %vm554_vm10, %v885_v16, %v570_v17 }
 0x21a   :  { %v775_v23 = vpack.c.bf16 %v586_v21, %v585_v20  ;;  %v584_v24 = vsel %vm552_vm11, %v515_v18, %v568_v19 }
 0x21b   :  { %v770_v25 = vpack.c.bf16 %v584_v24, %v583_v22 }
 0x21c   :  { %791 = vst [vmem:[#allocation9 + $0x28] sm:$0xff] %v775_v23   ;;  %v888_v26 = vpop.f32.mrb[12].mxu1 }
 0x21d   :  { %790 = vst [vmem:[#allocation9 + $0x20] sm:$0xff] %v770_v25   ;;  %v573_v27 = vmul.f32 0.01, %v888_v26  ;;  %v528_v28 = vpop.f32.mrb[13].mxu1  ;;  %vm557_vm12 = vcmp.ge.f32.partialorder %v888_v26, 0.0 }
 0x21e   :  { %v571_v29 = vmul.f32 0.01, %v528_v28  ;;  %v889_v30 = vpop.f32.mrb[14].mxu1  ;;  %vm555_vm13 = vcmp.ge.f32.partialorder %v528_v28, 0.0 }
 0x21f   :  { %vm558_vm14 = vcmp.ge.f32.partialorder %v889_v30, 0.0  ;;  %v574_v31 = vmul.f32 0.01, %v889_v30  ;;  %v531_v32 = vpop.f32.mrb[15].mxu1  ;;  %v589_v34 = vsel %vm557_vm12, %v888_v26, %v573_v27 }
 0x220   :  { %vm556_vm15 = vcmp.ge.f32.partialorder %v531_v32, 0.0  ;;  %v572_v33 = vmul.f32 0.01, %v531_v32  ;;  %v587_v36 = vsel %vm555_vm13, %v528_v28, %v571_v29 }
 0x221   :  { %v590_v35 = vsel %vm558_vm14, %v889_v30, %v574_v31 }
 0x222   :  { %v785_v37 = vpack.c.bf16 %v590_v35, %v589_v34  ;;  %v588_v38 = vsel %vm556_vm15, %v531_v32, %v572_v33 }
 0x223   :  { %v780_v39 = vpack.c.bf16 %v588_v38, %v587_v36 }
 0x224   :  { %793 = vst [vmem:[#allocation9 + $0x38] sm:$0xff] %v785_v37  }
 0x225   :  { %792 = vst [vmem:[#allocation9 + $0x30] sm:$0xff] %v780_v39  }
 0x226   :  { %997 = shalt.err (!%p994_p0)
}
 0x227   :  { %s998_s27 = scalar_lea.hbm %s1110_s3, 1024 }
 0x228   :  { %p999_p1 = scmp.ne.s32.totalorder %s1110_s3, %s998_s27  ;;  %p1002_p2 = scmp.lt.u32.totalorder %s998_s27, %s1110_s3 }
 0x22a   :  { %p1004_p3 = pnand %p1002_p2, %p999_p1 }
 0x22c   :  { %1007 = shalt.err (!%p1004_p3)
}
 0x22d   :  { %682 = dma.vmem_to_hbm [thread:$0]  %s677_s21, 1024, %s1110_s3, [#allocation5], %s1016_s24, %s1016_s24, %s1017_s25  }
 0x22e   :  { %1012 = dma.done.wait [#allocation5], 1024  }
 0x22f   :  { %1013 = vsyncadd [#allocation5], 4294966272 }
 0x230   :  { %686 = vsyncpa [#allocation4], 1 }
 0x231   :  { %687 = vsyncpa [#allocation7], 1 }
 0x232   :  { %688 = vsyncpa [#allocation5], 1 }

</bundles_post_ra>
